<compile_context>
chip_gen: v6e
topology: v6e:2x2x1
jax: 0.10.0
libtpu: 0.0.40
codegen_flags: <defaults>
</compile_context>

<pallas_src>
import jax
import jax.numpy as jnp
from jax.experimental import pallas as pl
from jax.experimental.pallas import tpu as pltpu

LATENT_DIM = 256
H1 = 512
H2 = 256
NEG_SLOPE = 0.2


def _round_up(x, m):
    return ((x + m - 1) // m) * m


def _discriminator_kernel(z_ref, w1_ref, b1_ref, w2_ref, b2_ref, w3_ref, b3_ref, o_ref):
    # z tile: (TB, 256) f32 straight from HBM; cast to bf16 here (VPU) for the MXU.
    z = z_ref[...].astype(jnp.bfloat16)

    # Layer 1: Linear(256 -> 512). bf16 inputs on the MXU, f32 accumulation.
    h1 = jnp.dot(z, w1_ref[...], preferred_element_type=jnp.float32) + b1_ref[...]
    h1 = jnp.maximum(h1, NEG_SLOPE * h1)                 # LeakyReLU(0.2), 2 VPU ops/elem

    # Layer 2: Linear(512 -> 256).
    h2 = jnp.dot(h1.astype(jnp.bfloat16), w2_ref[...],
                 preferred_element_type=jnp.float32) + b2_ref[...]
    h2 = jnp.maximum(h2, NEG_SLOPE * h2)

    # Layer 3: Linear(256 -> 1) as VPU multiply + lane-aligned pre-fold + XLU reduce
    # (avoids a lane-sparse N=1 MXU matmul; pre-fold halves the cross-lane reduce).
    p = h2 * w3_ref[...]                                 # (TB, 256) f32
    folded = p[:, :128] + p[:, 128:]                     # lane-aligned VPU add -> (TB, 128)
    out = jnp.sum(folded, axis=-1, keepdims=True) + b3_ref[...]
    o_ref[...] = out.astype(o_ref.dtype)


def discriminator_forward(z, params, block_b=2048):
    """z: (B, 256) f32. params: bf16 (in,out) w1/w2, f32 (1,256) w3 row, f32 biases."""
    B, D = z.shape
    assert D == LATENT_DIM, f"latent_dim must be {LATENT_DIM}, got {D}"

    # Batch tile: big enough to amortize per-step overhead, never exceeding the
    # (sublane-rounded) batch; always a multiple of 8 for the (8,128) layout rule.
    tb = min(block_b, _round_up(B, 8))
    tb = _round_up(tb, 8)
    grid_b = pl.cdiv(B, tb)   # ragged last tile: OOB rows are garbage, writes masked

    rep = lambda i: (0, 0)    # weights/biases: same block every step -> DMA'd once

    flops = 2 * B * (LATENT_DIM * H1 + H1 * H2 + H2)
    bytes_accessed = (B * LATENT_DIM * 4 + B * 4
                      + LATENT_DIM * H1 * 2 + H1 * H2 * 2
                      + (H1 + H2 + H2 + 1) * 4)

    out = pl.pallas_call(
        _discriminator_kernel,
        out_shape=jax.ShapeDtypeStruct((B, 1), jnp.float32),
        grid=(grid_b,),
        in_specs=[
            pl.BlockSpec((tb, LATENT_DIM), lambda i: (i, 0)),   # z tile (f32)
            pl.BlockSpec((LATENT_DIM, H1), rep),                # w1 (bf16, resident)
            pl.BlockSpec((1, H1), rep),                         # b1 (f32)
            pl.BlockSpec((H1, H2), rep),                        # w2 (bf16, resident)
            pl.BlockSpec((1, H2), rep),                         # b2 (f32)
            pl.BlockSpec((1, H2), rep),                         # w3 row (f32)
            pl.BlockSpec((1, 1), rep),                          # b3 (f32)
        ],
        out_specs=pl.BlockSpec((tb, 1), lambda i: (i, 0)),
        compiler_params=pltpu.CompilerParams(
            dimension_semantics=("parallel",),
            vmem_limit_bytes=48 * 1024 * 1024),
        cost_estimate=pl.CostEstimate(flops=flops, transcendentals=0,
                                      bytes_accessed=bytes_accessed),
    )(z, params["w1"], params["b1"], params["w2"], params["b2"],
      params["w3"], params["b3"])
    return out


def init_params(key, latent_dim=256):
    """Synthetic init mimicking nn.Linear's uniform(-1/sqrt(fan_in), 1/sqrt(fan_in)).

    w1/w2 stored transposed to (in, out) in bf16 for x @ W on the MXU;
    w3 stored as a (1, 256) f32 row for the VPU/XLU reduction; biases f32 (1, out)."""
    dims = [(latent_dim, H1), (H1, H2), (H2, 1)]
    params = {}
    for idx, (fan_in, fan_out) in enumerate(dims, start=1):
        key, kw, kb = jax.random.split(key, 3)
        bound = 1.0 / jnp.sqrt(jnp.float32(fan_in))
        w = jax.random.uniform(kw, (fan_in, fan_out), jnp.float32,
                               minval=-bound, maxval=bound)
        b = jax.random.uniform(kb, (1, fan_out), jnp.float32,
                               minval=-bound, maxval=bound)
        if idx < 3:
            params[f"w{idx}"] = w.astype(jnp.bfloat16)
        else:
            params[f"w{idx}"] = w.T  # (1, 256) f32 row
        params[f"b{idx}"] = b
    return params


def reference_forward(z, params):
    """Pure-JAX reference mirroring the kernel's bf16 quantization points exactly."""
    zb = z.astype(jnp.bfloat16).astype(jnp.float32)
    w1 = params["w1"].astype(jnp.float32)
    w2 = params["w2"].astype(jnp.float32)
    h1 = zb @ w1 + params["b1"]
    h1 = jnp.maximum(h1, NEG_SLOPE * h1)
    h1b = h1.astype(jnp.bfloat16).astype(jnp.float32)
    h2 = h1b @ w2 + params["b2"]
    h2 = jnp.maximum(h2, NEG_SLOPE * h2)
    return h2 @ params["w3"].T + params["b3"]


def reference_forward_f32(z, params):
    """Full-precision reference of the original PyTorch semantics (sanity check)."""
    w1 = params["w1"].astype(jnp.float32)
    w2 = params["w2"].astype(jnp.float32)
    h1 = z @ w1 + params["b1"]
    h1 = jnp.maximum(h1, NEG_SLOPE * h1)
    h2 = h1 @ w2 + params["b2"]
    h2 = jnp.maximum(h2, NEG_SLOPE * h2)
    return h2 @ params["w3"].T + params["b3"]


if __name__ == "__main__":
    key = jax.random.PRNGKey(0)
    k_params, k_z = jax.random.split(key)
    params = init_params(k_params, LATENT_DIM)

    # --- Small single-tile test (grid = 1) ---
    batch = 8
    z = jax.random.normal(k_z, (batch, LATENT_DIM), jnp.float32)
    out = jax.block_until_ready(discriminator_forward(z, params))
    assert out.shape == (batch, 1)

    ref = reference_forward(z, params)
    assert jnp.allclose(out, ref, atol=1e-3, rtol=1e-3), "mismatch vs bf16-mirroring reference"
    ref32 = reference_forward_f32(z, params)
    assert jnp.allclose(out, ref32, atol=5e-2, rtol=5e-2), "mismatch vs f32 reference"

    # --- Multi-tile + ragged-last-tile test (grid > 1, B % tb != 0) ---
    batch2 = 200
    z2 = jax.random.normal(jax.random.fold_in(k_z, 1), (batch2, LATENT_DIM), jnp.float32)
    out2 = jax.block_until_ready(discriminator_forward(z2, params, block_b=64))
    assert out2.shape == (batch2, 1)
    ref2 = reference_forward(z2, params)
    assert jnp.allclose(out2, ref2, atol=1e-3, rtol=1e-3), "multi-tile mismatch vs reference"

    print("KERNEL_OK")
</pallas_src>

<mosaic_0001>
module attributes {stable_mosaic.version = 11 : i64} {
  func.func @_discriminator_kernel(%arg0: i32, %arg1: memref<8x256xf32, #tpu.memory_space<vmem>>, %arg2: memref<256x512xbf16, #tpu.memory_space<vmem>>, %arg3: memref<1x512xf32, #tpu.memory_space<vmem>>, %arg4: memref<512x256xbf16, #tpu.memory_space<vmem>>, %arg5: memref<1x256xf32, #tpu.memory_space<vmem>>, %arg6: memref<1x256xf32, #tpu.memory_space<vmem>>, %arg7: memref<1x1xf32, #tpu.memory_space<vmem>>, %arg8: memref<8x1xf32, #tpu.memory_space<vmem>>) attributes {dimension_semantics = [#tpu.dimension_semantics<parallel>], iteration_bounds = array<i64: 1>, scalar_prefetch = 0 : i64, scratch_operands = 0 : i64, tpu.core_type = #tpu.core_type<tc>, window_params = [{transform_indices = @transform_0, window_bounds = array<i64: 8, 256>}, {pipeline_mode = #tpu.pipeline_mode<synchronous>, transform_indices = @transform_1, window_bounds = array<i64: 256, 512>}, {pipeline_mode = #tpu.pipeline_mode<synchronous>, transform_indices = @transform_2, window_bounds = array<i64: 1, 512>}, {pipeline_mode = #tpu.pipeline_mode<synchronous>, transform_indices = @transform_3, window_bounds = array<i64: 512, 256>}, {pipeline_mode = #tpu.pipeline_mode<synchronous>, transform_indices = @transform_4, window_bounds = array<i64: 1, 256>}, {pipeline_mode = #tpu.pipeline_mode<synchronous>, transform_indices = @transform_5, window_bounds = array<i64: 1, 256>}, {pipeline_mode = #tpu.pipeline_mode<synchronous>, transform_indices = @transform_6, window_bounds = array<i64: 1, 1>}, {transform_indices = @transform_7, window_bounds = array<i64: 8, 1>}]} {
    %c0 = arith.constant 0 : index
    %c0_0 = arith.constant 0 : index
    %0 = vector.load %arg1[%c0, %c0_0] : memref<8x256xf32, #tpu.memory_space<vmem>>, vector<8x256xf32>
    %1 = arith.truncf %0 : vector<8x256xf32> to vector<8x256xbf16>
    %c0_1 = arith.constant 0 : index
    %c0_2 = arith.constant 0 : index
    %2 = vector.load %arg2[%c0_1, %c0_2] : memref<256x512xbf16, #tpu.memory_space<vmem>>, vector<256x512xbf16>
    %cst = arith.constant dense<0.000000e+00> : vector<8x512xf32>
    %3 = tpu.matmul %1, %2, %cst {dimension_numbers = #tpu.dot_dimension_numbers<[1], [0], [0], [1], [0, 0, 1, 1], [], []>} : vector<8x256xbf16>, vector<256x512xbf16>, vector<8x512xf32> -> vector<8x512xf32>
    %c0_3 = arith.constant 0 : index
    %c0_4 = arith.constant 0 : index
    %4 = vector.load %arg3[%c0_3, %c0_4] : memref<1x512xf32, #tpu.memory_space<vmem>>, vector<1x512xf32>
    %5 = vector.broadcast %4 : vector<1x512xf32> to vector<8x512xf32>
    %6 = arith.addf %3, %5 : vector<8x512xf32>
    %cst_5 = arith.constant 2.000000e-01 : f32
    %7 = vector.broadcast %cst_5 : f32 to vector<8x512xf32>
    %8 = arith.mulf %7, %6 : vector<8x512xf32>
    %9 = arith.maximumf %6, %8 : vector<8x512xf32>
    %10 = arith.truncf %9 : vector<8x512xf32> to vector<8x512xbf16>
    %c0_6 = arith.constant 0 : index
    %c0_7 = arith.constant 0 : index
    %11 = vector.load %arg4[%c0_6, %c0_7] : memref<512x256xbf16, #tpu.memory_space<vmem>>, vector<512x256xbf16>
    %cst_8 = arith.constant dense<0.000000e+00> : vector<8x256xf32>
    %12 = tpu.matmul %10, %11, %cst_8 {dimension_numbers = #tpu.dot_dimension_numbers<[1], [0], [0], [1], [0, 0, 1, 1], [], []>} : vector<8x512xbf16>, vector<512x256xbf16>, vector<8x256xf32> -> vector<8x256xf32>
    %c0_9 = arith.constant 0 : index
    %c0_10 = arith.constant 0 : index
    %13 = vector.load %arg5[%c0_9, %c0_10] : memref<1x256xf32, #tpu.memory_space<vmem>>, vector<1x256xf32>
    %14 = vector.broadcast %13 : vector<1x256xf32> to vector<8x256xf32>
    %15 = arith.addf %12, %14 : vector<8x256xf32>
    %cst_11 = arith.constant 2.000000e-01 : f32
    %16 = vector.broadcast %cst_11 : f32 to vector<8x256xf32>
    %17 = arith.mulf %16, %15 : vector<8x256xf32>
    %18 = arith.maximumf %15, %17 : vector<8x256xf32>
    %c0_12 = arith.constant 0 : index
    %c0_13 = arith.constant 0 : index
    %19 = vector.load %arg6[%c0_12, %c0_13] : memref<1x256xf32, #tpu.memory_space<vmem>>, vector<1x256xf32>
    %20 = vector.broadcast %19 : vector<1x256xf32> to vector<8x256xf32>
    %21 = arith.mulf %18, %20 : vector<8x256xf32>
    %22 = vector.extract_strided_slice %21 {offsets = [0, 0], sizes = [8, 128], strides = [1, 1]} : vector<8x256xf32> to vector<8x128xf32>
    %23 = vector.extract_strided_slice %21 {offsets = [0, 128], sizes = [8, 128], strides = [1, 1]} : vector<8x256xf32> to vector<8x128xf32>
    %24 = arith.addf %22, %23 : vector<8x128xf32>
    %cst_14 = arith.constant dense<0.000000e+00> : vector<8xf32>
    %25 = vector.multi_reduction <add>, %24, %cst_14 [1] : vector<8x128xf32> to vector<8xf32>
    %26 = vector.shape_cast %25 : vector<8xf32> to vector<8x1xf32>
    %c0_15 = arith.constant 0 : index
    %c0_16 = arith.constant 0 : index
    %27 = vector.load %arg7[%c0_15, %c0_16] : memref<1x1xf32, #tpu.memory_space<vmem>>, vector<1x1xf32>
    %28 = vector.broadcast %27 : vector<1x1xf32> to vector<8x1xf32>
    %29 = arith.addf %26, %28 : vector<8x1xf32>
    %c0_17 = arith.constant 0 : index
    %c0_18 = arith.constant 0 : index
    %30 = vector.load %arg8[%c0_17, %c0_18] : memref<8x1xf32, #tpu.memory_space<vmem>>, vector<8x1xf32>
    tpu.vector_store %arg8[%c0_17, %c0_18], %29 {strides = array<i32>} : memref<8x1xf32, #tpu.memory_space<vmem>>, vector<8x1xf32>,
    return
  }
  func.func @transform_0(%arg0: i32) -> (i32, i32) {
    %c0_i32 = arith.constant 0 : i32
    %c0_i32_0 = arith.constant 0 : i32
    return %arg0, %c0_i32 : i32, i32
  }
  func.func @transform_1(%arg0: i32) -> (i32, i32) {
    %c0_i32 = arith.constant 0 : i32
    %c0_i32_0 = arith.constant 0 : i32
    %c0_i32_1 = arith.constant 0 : i32
    return %c0_i32, %c0_i32_0 : i32, i32
  }
  func.func @transform_2(%arg0: i32) -> (i32, i32) {
    %c0_i32 = arith.constant 0 : i32
    %c0_i32_0 = arith.constant 0 : i32
    %c0_i32_1 = arith.constant 0 : i32
    return %c0_i32, %c0_i32_0 : i32, i32
  }
  func.func @transform_3(%arg0: i32) -> (i32, i32) {
    %c0_i32 = arith.constant 0 : i32
    %c0_i32_0 = arith.constant 0 : i32
    %c0_i32_1 = arith.constant 0 : i32
    return %c0_i32, %c0_i32_0 : i32, i32
  }
  func.func @transform_4(%arg0: i32) -> (i32, i32) {
    %c0_i32 = arith.constant 0 : i32
    %c0_i32_0 = arith.constant 0 : i32
    %c0_i32_1 = arith.constant 0 : i32
    return %c0_i32, %c0_i32_0 : i32, i32
  }
  func.func @transform_5(%arg0: i32) -> (i32, i32) {
    %c0_i32 = arith.constant 0 : i32
    %c0_i32_0 = arith.constant 0 : i32
    %c0_i32_1 = arith.constant 0 : i32
    return %c0_i32, %c0_i32_0 : i32, i32
  }
  func.func @transform_6(%arg0: i32) -> (i32, i32) {
    %c0_i32 = arith.constant 0 : i32
    %c0_i32_0 = arith.constant 0 : i32
    %c0_i32_1 = arith.constant 0 : i32
    return %c0_i32, %c0_i32_0 : i32, i32
  }
  func.func @transform_7(%arg0: i32) -> (i32, i32) {
    %c0_i32 = arith.constant 0 : i32
    %c0_i32_0 = arith.constant 0 : i32
    return %arg0, %c0_i32 : i32, i32
  }
}

</mosaic_0001>

<bundles_post_ra>
// kernel: tpu_custom_call.1
= control target key start
LH: loop header
LB: loop body
LE: loop exit
PB: predicated region body
PF: predicated region fallthrough
CT: control target
= control target key end

     0   :  { %s1549_s0 = inlined_call_operand.hbm [shape: f32[8,256], index: 0, kind: input, shape index: {}]   ;;  %s1550_s1 = inlined_call_operand.hbm [shape: bf16[256,512], index: 1, kind: input, shape index: {}]   ;;  %s1551_s2 = inlined_call_operand.vmem [shape: f32[1,512], index: 2, kind: input, shape index: {}]   ;;  %s1552_s3 = inlined_call_operand.hbm [shape: bf16[512,256], index: 3, kind: input, shape index: {}]   ;;  %s1553_s4 = inlined_call_operand.vmem [shape: f32[1,256], index: 4, kind: input, shape index: {}]   ;;  %s1554_s5 = inlined_call_operand.vmem [shape: f32[1,256], index: 5, kind: input, shape index: {}]   ;;  %s1555_s6 = inlined_call_operand.<no memory space> [shape: f32[1,1], index: 6, kind: input, shape index: {}]   ;;  %s1556_s7 = inlined_call_operand.vmem [shape: f32[8,1], index: 7, kind: output, shape index: {}]  }
   0x1   :  { %v12_v0 = vstv %s1555_s6 }
   0x2   :  { %13 = vst [vmem:[#allocation2] sm:$0x1] %v12_v0 }
   0x3   :  { %14 = vsyncpa [#allocation4], 0 }
   0x4   :  { %15 = vsyncpa [#allocation6], 0  ;;  %s1478_s26 = smov [#allocation5]  }
   0x5   :  { %s31_s27 = sshll.u32 %s1478_s26, 4  ;;  %s32_s27 = int_to_ptr.vmem [resolvable:$true] %s31_s27 }
   0x6   :  { %s1422_s28 = scalar_lea.vmem %s32_s27, 8192  ;;  %p1427_p1 = scmp.lt.s32.totalorder %s32_s27, %s32_s27 }
   0x7   :  { %p1423_p0 = scmp.ne.s32.totalorder %s32_s27, %s1422_s28  ;;  %p1428_p2 = scmp.lt.s32.totalorder %s1422_s28, %s1422_s28 }
   0x9   :  { %p1429_p3 = por %p1428_p2, %p1427_p1 }
   0xb   :  { %p1430_p4 = pnand %p1429_p3, %p1423_p0 }
   0xd   :  { %1433 = shalt.err (!%p1430_p4)
}
   0xe   :  { %s1479_s29 = smov 256   ;;  %s1480_s30 = smov 16  }
   0xf   :  { %37 = dma.hbm_to_vmem [thread:$0]  %s1550_s1, 8192, %s32_s27, [#allocation6], %s1479_s29, %s1479_s29, %s1480_s30  }
  0x10   :  { %s1481_s6 = smov [#allocation3]   ;;  %s1482_s11 = smov [#allocation7]  }
  0x11   :  { %s22_s10 = sshll.u32 %s1481_s6, 4  ;;  %s45_s12 = sshll.u32 %s1482_s11, 4  ;;  %s23_s10 = int_to_ptr.vmem [resolvable:$true] %s22_s10  ;;  %s46_s12 = int_to_ptr.vmem [resolvable:$true] %s45_s12 }
  0x12   :  { %s1442_s13 = scalar_lea.vmem %s23_s10, 256  ;;  %p1447_p6 = scmp.lt.s32.totalorder %s23_s10, %s23_s10 }
  0x13   :  { %p1443_p5 = scmp.ne.s32.totalorder %s23_s10, %s1442_s13  ;;  %p1448_p7 = scmp.lt.s32.totalorder %s1442_s13, %s1442_s13 }
  0x15   :  { %p1449_p8 = por %p1448_p7, %p1447_p6 }
  0x17   :  { %p1450_p9 = pnand %p1449_p8, %p1443_p5 }
  0x19   :  { %1453 = shalt.err (!%p1450_p9)
}
  0x1a   :  { %25 = dma.hbm_to_vmem [thread:$0]  %s1549_s0, 256, %s23_s10, [#allocation4]  }
  0x1b   :  { %s1462_s16 = scalar_lea.vmem %s46_s12, 8192  ;;  %p1467_p11 = scmp.lt.s32.totalorder %s46_s12, %s46_s12 }
  0x1c   :  { %p1463_p10 = scmp.ne.s32.totalorder %s46_s12, %s1462_s16  ;;  %p1468_p12 = scmp.lt.s32.totalorder %s1462_s16, %s1462_s16 }
  0x1e   :  { %p1469_p13 = por %p1468_p12, %p1467_p11 }
  0x20   :  { %p1470_p0 = pnand %p1469_p13, %p1463_p10 }
  0x22   :  { %1473 = shalt.err (!%p1470_p0)
}
  0x23   :  { %s1483_s1 = smov 128   ;;  %s1484_s17 = smov 8  }
  0x24   :  { %51 = dma.hbm_to_vmem [thread:$0]  %s1552_s3, 8192, %s46_s12, [#allocation6], %s1483_s1, %s1483_s1, %s1484_s17  }
  0x25   :  { %1474 = dma.done.wait [#allocation4], 256  }
  0x26   :  { %1475 = vsyncadd [#allocation4], 4294967040 }
  0x27   :  { %1476 = dma.done.wait [#allocation6], 16384  }
  0x28   :  { %1477 = vsyncadd [#allocation6], 4294950912  ;;  %v1222_v1 = vld [vmem:[#allocation5 + $0xe4] ss:$16 sps:$4 sm:$0xff]   ;;  %v1224_v2 = vld [vmem:[#allocation5 + $0xec] ss:$16 sps:$4 sm:$0xff]  }
  0x29   :  { %477 = vmatprep.subr.bf16.mxu0 %v1222_v1  ;;  %v1226_v3 = vld [vmem:[#allocation5 + $0xe0] ss:$16 sps:$4 sm:$0xff]   ;;  %v1227_v4 = vld [vmem:[#allocation5 + $0xe8] ss:$16 sps:$4 sm:$0xff]   ;;  %518 = vmatprep.subr.bf16.mxu1 %v1224_v2  ;;  %v1228_v5 = vld [vmem:[#allocation5 + $0xc4] ss:$16 sps:$4 sm:$0xff]  }
  0x2a   :  { %478 = vmatpush1.bf16.msra.mxu0 %v1226_v3  ;;  %519 = vmatpush1.bf16.msra.mxu1 %v1227_v4  ;;  %v1230_v6 = vld [vmem:[#allocation5 + $0xcc] ss:$16 sps:$4 sm:$0xff]   ;;  %v1232_v7 = vld [vmem:[#allocation5 + $0xc0] ss:$16 sps:$4 sm:$0xff]   ;;  %v1233_v8 = vld [vmem:[#allocation5 + $0xc8] ss:$16 sps:$4 sm:$0xff]  }
  0x2b   :  { %479 = vmatprep.subr.bf16.mxu0 %v1228_v5  ;;  %520 = vmatprep.subr.bf16.mxu1 %v1230_v6  ;;  %v1234_v9 = vld [vmem:[#allocation5 + $0xa4] ss:$16 sps:$4 sm:$0xff]   ;;  %v1236_v10 = vld [vmem:[#allocation5 + $0xac] ss:$16 sps:$4 sm:$0xff]   ;;  %v1238_v11 = vld [vmem:[#allocation5 + $0xa0] ss:$16 sps:$4 sm:$0xff]  }
  0x2c   :  { %v1239_v12 = vld [vmem:[#allocation5 + $0xa8] ss:$16 sps:$4 sm:$0xff]   ;;  %v1240_v13 = vld [vmem:[#allocation5 + $0x84] ss:$16 sps:$4 sm:$0xff]   ;;  %v1242_v14 = vld [vmem:[#allocation5 + $0x8c] ss:$16 sps:$4 sm:$0xff]  }
  0x2d   :  { %v1244_v15 = vld [vmem:[#allocation5 + $0x80] ss:$16 sps:$4 sm:$0xff]   ;;  %v1245_v16 = vld [vmem:[#allocation5 + $0x88] ss:$16 sps:$4 sm:$0xff]   ;;  %v1246_v17 = vld [vmem:[#allocation5 + $0x64] ss:$16 sps:$4 sm:$0xff]  }
  0x2e   :  { %480 = vmatpush1.bf16.msra.mxu0 %v1232_v7  ;;  %521 = vmatpush1.bf16.msra.mxu1 %v1233_v8  ;;  %v1248_v18 = vld [vmem:[#allocation5 + $0x6c] ss:$16 sps:$4 sm:$0xff]   ;;  %v1250_v19 = vld [vmem:[#allocation5 + $0x60] ss:$16 sps:$4 sm:$0xff]   ;;  %v1251_v20 = vld [vmem:[#allocation5 + $0x68] ss:$16 sps:$4 sm:$0xff]  }
  0x2f   :  { %481 = vmatprep.subr.bf16.mxu0 %v1234_v9  ;;  %522 = vmatprep.subr.bf16.mxu1 %v1236_v10  ;;  %v1252_v21 = vld [vmem:[#allocation5 + $0x44] ss:$16 sps:$4 sm:$0xff]   ;;  %v1254_v22 = vld [vmem:[#allocation5 + $0x4c] ss:$16 sps:$4 sm:$0xff]   ;;  %v1256_v23 = vld [vmem:[#allocation5 + $0x40] ss:$16 sps:$4 sm:$0xff]  }
  0x30   :  { %v1257_v24 = vld [vmem:[#allocation5 + $0x48] ss:$16 sps:$4 sm:$0xff]   ;;  %v1258_v25 = vld [vmem:[#allocation5 + $0x24] ss:$16 sps:$4 sm:$0xff]   ;;  %v1260_v26 = vld [vmem:[#allocation5 + $0x2c] ss:$16 sps:$4 sm:$0xff]  }
  0x31   :  { %v1262_v27 = vld [vmem:[#allocation5 + $0x20] ss:$16 sps:$4 sm:$0xff]   ;;  %v1263_v28 = vld [vmem:[#allocation5 + $0x28] ss:$16 sps:$4 sm:$0xff]   ;;  %v1264_v29 = vld [vmem:[#allocation5 + $0x4] ss:$16 sps:$4 sm:$0xff]  }
  0x32   :  { %482 = vmatpush1.bf16.msra.mxu0 %v1238_v11  ;;  %523 = vmatpush1.bf16.msra.mxu1 %v1239_v12  ;;  %v1266_v30 = vld [vmem:[#allocation5 + $0xc] ss:$16 sps:$4 sm:$0xff]   ;;  %v1268_v31 = vld [vmem:[#allocation5] ss:$16 sps:$4 sm:$0xff]   ;;  %v1269_v32 = vld [vmem:[#allocation5 + $0x8] ss:$16 sps:$4 sm:$0xff]  }
  0x33   :  { %483 = vmatprep.subr.bf16.mxu0 %v1240_v13  ;;  %524 = vmatprep.subr.bf16.mxu1 %v1242_v14  ;;  %v1270_v33 = vld [vmem:[#allocation5 + $0x1e4] ss:$16 sps:$4 sm:$0xff]   ;;  %v1272_v34 = vld [vmem:[#allocation5 + $0x1ec] ss:$16 sps:$4 sm:$0xff]   ;;  %v1274_v35 = vld [vmem:[#allocation5 + $0x1e0] ss:$16 sps:$4 sm:$0xff]  }
  0x34   :  { %v1275_v36 = vld [vmem:[#allocation5 + $0x1e8] ss:$16 sps:$4 sm:$0xff]   ;;  %v1276_v37 = vld [vmem:[#allocation5 + $0x1c4] ss:$16 sps:$4 sm:$0xff]   ;;  %v1278_v38 = vld [vmem:[#allocation5 + $0x1cc] ss:$16 sps:$4 sm:$0xff]  }
  0x35   :  { %v1280_v39 = vld [vmem:[#allocation5 + $0x1c0] ss:$16 sps:$4 sm:$0xff]   ;;  %v1281_v40 = vld [vmem:[#allocation5 + $0x1c8] ss:$16 sps:$4 sm:$0xff]   ;;  %v1282_v41 = vld [vmem:[#allocation5 + $0x1a4] ss:$16 sps:$4 sm:$0xff]  }
  0x36   :  { %484 = vmatpush1.bf16.msra.mxu0 %v1244_v15  ;;  %525 = vmatpush1.bf16.msra.mxu1 %v1245_v16  ;;  %v1284_v42 = vld [vmem:[#allocation5 + $0x1ac] ss:$16 sps:$4 sm:$0xff]   ;;  %v1286_v43 = vld [vmem:[#allocation5 + $0x1a0] ss:$16 sps:$4 sm:$0xff]   ;;  %v1287_v44 = vld [vmem:[#allocation5 + $0x1a8] ss:$16 sps:$4 sm:$0xff]  }
  0x37   :  { %485 = vmatprep.subr.bf16.mxu0 %v1246_v17  ;;  %526 = vmatprep.subr.bf16.mxu1 %v1248_v18  ;;  %v1288_v45 = vld [vmem:[#allocation5 + $0x184] ss:$16 sps:$4 sm:$0xff]   ;;  %v1290_v46 = vld [vmem:[#allocation5 + $0x18c] ss:$16 sps:$4 sm:$0xff]   ;;  %v1292_v49 = vld [vmem:[#allocation5 + $0x180] ss:$16 sps:$4 sm:$0xff]  }
  0x38   :  { %v68_v47 = vld [vmem:[#allocation3 + $0x8] sm:$0xff]  ;;  %v1294_v51 = vld [vmem:[#allocation5 + $0x164] ss:$16 sps:$4 sm:$0xff]   ;;  %v1298_v53 = vld [vmem:[#allocation5 + $0x160] ss:$16 sps:$4 sm:$0xff]   ;;  %vm1078_vm0 = vcmask 7168  }
  0x39   :  { %v70_v48 = vpack.c.bf16 %v68_v47, %v68_v47  ;;  %v1293_v50 = vld [vmem:[#allocation5 + $0x188] ss:$16 sps:$4 sm:$0xff]   ;;  %v1296_v52 = vld [vmem:[#allocation5 + $0x16c] ss:$16 sps:$4 sm:$0xff]   ;;  %v1300_v55 = vld [vmem:[#allocation5 + $0x144] ss:$16 sps:$4 sm:$0xff]  }
  0x3a   :  { %486 = vmatpush1.bf16.msra.mxu0 %v1250_v19  ;;  %527 = vmatpush1.bf16.msra.mxu1 %v1251_v20  ;;  %v1299_v54 = vld [vmem:[#allocation5 + $0x168] ss:$16 sps:$4 sm:$0xff]   ;;  %v1302_v56 = vld [vmem:[#allocation5 + $0x14c] ss:$16 sps:$4 sm:$0xff]   ;;  %v1304_v57 = vld [vmem:[#allocation5 + $0x140] ss:$16 sps:$4 sm:$0xff]  }
  0x3b   :  { %487 = vmatprep.subr.bf16.mxu0 %v1252_v21  ;;  %528 = vmatprep.subr.bf16.mxu1 %v1254_v22  ;;  %v1305_v58 = vld [vmem:[#allocation5 + $0x148] ss:$16 sps:$4 sm:$0xff]   ;;  %v1306_v59 = vld [vmem:[#allocation5 + $0x124] ss:$16 sps:$4 sm:$0xff]   ;;  %v1308_v60 = vld [vmem:[#allocation5 + $0x12c] ss:$16 sps:$4 sm:$0xff]  }
  0x3c   :  { %509 = vmatprep.mubr.bf16.mxu0 %v70_v48  ;;  %550 = vmatprep.mubr.bf16.mxu1 %v70_v48  ;;  %v1310_v61 = vld [vmem:[#allocation5 + $0x120] ss:$16 sps:$4 sm:$0xff]   ;;  %v1311_v62 = vld [vmem:[#allocation5 + $0x128] ss:$16 sps:$4 sm:$0xff]   ;;  %v1312_v63 = vld [vmem:[#allocation5 + $0x104] ss:$16 sps:$4 sm:$0xff]  }
  0x3d   :  { %v1314_v0 = vld [vmem:[#allocation5 + $0x10c] ss:$16 sps:$4 sm:$0xff]   ;;  %v1316_v1 = vld [vmem:[#allocation5 + $0x100] ss:$16 sps:$4 sm:$0xff]   ;;  %v1317_v2 = vld [vmem:[#allocation5 + $0x108] ss:$16 sps:$4 sm:$0xff]  }
  0x3e   :  { %488 = vmatpush1.bf16.msra.mxu0 %v1256_v23  ;;  %529 = vmatpush1.bf16.msra.mxu1 %v1257_v24  ;;  %v67_v3 = vld [vmem:[#allocation3] sm:$0xff]  ;;  %v1326_v9 = vld [vmem:[#allocation7 + $0x64] ss:$8 sps:$4 sm:$0xff]   ;;  %v1324_v11 = vld [vmem:[#allocation7 + $0x60] ss:$8 sps:$4 sm:$0xff]  }
  0x3f   :  { %489 = vmatprep.subr.bf16.mxu0 %v1258_v25  ;;  %530 = vmatprep.subr.bf16.mxu1 %v1260_v26  ;;  %v1320_v4 = vld [vmem:[#allocation7 + $0x74] ss:$8 sps:$4 sm:$0xff]   ;;  %v69_v6 = vpack.c.bf16 %v67_v3, %v67_v3  ;;  %v1318_v7 = vld [vmem:[#allocation7 + $0x70] ss:$8 sps:$4 sm:$0xff]   ;;  %v1329_v10 = vld [vmem:[#allocation7 + $0x164] ss:$8 sps:$4 sm:$0xff]  }
  0x40   :  { %v1323_v5 = vld [vmem:[#allocation7 + $0x174] ss:$8 sps:$4 sm:$0xff]   ;;  %v1321_v8 = vld [vmem:[#allocation7 + $0x170] ss:$8 sps:$4 sm:$0xff]   ;;  %v1327_v12 = vld [vmem:[#allocation7 + $0x160] ss:$8 sps:$4 sm:$0xff]  }
  0x41   :  { %v1332_v13 = vld [vmem:[#allocation7 + $0x54] ss:$8 sps:$4 sm:$0xff]   ;;  %v1330_v15 = vld [vmem:[#allocation7 + $0x50] ss:$8 sps:$4 sm:$0xff]   ;;  %v1338_v17 = vld [vmem:[#allocation7 + $0x44] ss:$8 sps:$4 sm:$0xff]  }
  0x42   :  { %490 = vmatpush1.bf16.msra.mxu0 %v1262_v27  ;;  %531 = vmatpush1.bf16.msra.mxu1 %v1263_v28  ;;  %v1335_v14 = vld [vmem:[#allocation7 + $0x154] ss:$8 sps:$4 sm:$0xff]   ;;  %v1333_v16 = vld [vmem:[#allocation7 + $0x150] ss:$8 sps:$4 sm:$0xff]   ;;  %v1341_v18 = vld [vmem:[#allocation7 + $0x144] ss:$8 sps:$4 sm:$0xff]  }
  0x43   :  { %491 = vmatprep.subr.bf16.mxu0 %v1264_v29  ;;  %532 = vmatprep.subr.bf16.mxu1 %v1266_v30  ;;  %v1336_v19 = vld [vmem:[#allocation7 + $0x40] ss:$8 sps:$4 sm:$0xff]   ;;  %v1344_v21 = vld [vmem:[#allocation7 + $0x34] ss:$8 sps:$4 sm:$0xff]   ;;  %v1342_v23 = vld [vmem:[#allocation7 + $0x30] ss:$8 sps:$4 sm:$0xff]  }
  0x44   :  { %v1339_v20 = vld [vmem:[#allocation7 + $0x140] ss:$8 sps:$4 sm:$0xff]   ;;  %v1347_v22 = vld [vmem:[#allocation7 + $0x134] ss:$8 sps:$4 sm:$0xff]   ;;  %v1345_v24 = vld [vmem:[#allocation7 + $0x130] ss:$8 sps:$4 sm:$0xff]  }
  0x45   :  { %v1350_v25 = vld [vmem:[#allocation7 + $0x24] ss:$8 sps:$4 sm:$0xff]   ;;  %v1348_v27 = vld [vmem:[#allocation7 + $0x20] ss:$8 sps:$4 sm:$0xff]   ;;  %v1356_v29 = vld [vmem:[#allocation7 + $0x14] ss:$8 sps:$4 sm:$0xff]  }
  0x46   :  { %492 = vmatpush1.bf16.msra.mxu0 %v1268_v31  ;;  %533 = vmatpush1.bf16.msra.mxu1 %v1269_v32  ;;  %v1353_v26 = vld [vmem:[#allocation7 + $0x124] ss:$8 sps:$4 sm:$0xff]   ;;  %v1351_v28 = vld [vmem:[#allocation7 + $0x120] ss:$8 sps:$4 sm:$0xff]   ;;  %v1359_v30 = vld [vmem:[#allocation7 + $0x114] ss:$8 sps:$4 sm:$0xff]  }
  0x47   :  { %493 = vmatprep.subr.bf16.mxu0 %v1270_v33  ;;  %534 = vmatprep.subr.bf16.mxu1 %v1272_v34  ;;  %v1354_v31 = vld [vmem:[#allocation7 + $0x10] ss:$8 sps:$4 sm:$0xff]   ;;  %v1362_v33 = vld [vmem:[#allocation7 + $0x4] ss:$8 sps:$4 sm:$0xff]   ;;  %v1408_v3 = vld [vmem:[#allocation7 + $0x80] ss:$8 sps:$4 sm:$0xff]  }
  0x48   :  { %v1357_v32 = vld [vmem:[#allocation7 + $0x110] ss:$8 sps:$4 sm:$0xff]   ;;  %v1365_v34 = vld [vmem:[#allocation7 + $0x104] ss:$8 sps:$4 sm:$0xff]  }
  0x49   :  { %v1378_v47 = vld [vmem:[#allocation7 + $0xd0] ss:$8 sps:$4 sm:$0xff]  }
  0x4a   :  { %494 = vmatpush2.bf16.msra.mxu0 %v1274_v35  ;;  %535 = vmatpush2.bf16.msra.mxu1 %v1275_v36  ;;  %v1360_v35 = vld [vmem:[#allocation7] ss:$8 sps:$4 sm:$0xff]   ;;  %v1381_v48 = vld [vmem:[#allocation7 + $0x1d0] ss:$8 sps:$4 sm:$0xff]  }
  0x4b   :  { %495 = vmatprep.subr.bf16.mxu0 %v1276_v37  ;;  %536 = vmatprep.subr.bf16.mxu1 %v1278_v38  ;;  %v1363_v36 = vld [vmem:[#allocation7 + $0x100] ss:$8 sps:$4 sm:$0xff]   ;;  %v1368_v37 = vld [vmem:[#allocation7 + $0xf4] ss:$8 sps:$4 sm:$0xff]  }
  0x4c   :  { %v1371_v38 = vld [vmem:[#allocation7 + $0x1f4] ss:$8 sps:$4 sm:$0xff]  }
  0x4e   :  { %496 = vmatpush2.bf16.msra.mxu0 %v1280_v39  ;;  %537 = vmatpush2.bf16.msra.mxu1 %v1281_v40  ;;  %v1366_v39 = vld [vmem:[#allocation7 + $0xf0] ss:$8 sps:$4 sm:$0xff]  }
  0x4f   :  { %497 = vmatprep.subr.bf16.mxu0 %v1282_v41  ;;  %538 = vmatprep.subr.bf16.mxu1 %v1284_v42  ;;  %v1369_v40 = vld [vmem:[#allocation7 + $0x1f0] ss:$8 sps:$4 sm:$0xff]   ;;  %v1374_v41 = vld [vmem:[#allocation7 + $0xe4] ss:$8 sps:$4 sm:$0xff]  }
  0x50   :  { %v1377_v42 = vld [vmem:[#allocation7 + $0x1e4] ss:$8 sps:$4 sm:$0xff]  }
  0x52   :  { %498 = vmatpush2.bf16.msra.mxu0 %v1286_v43  ;;  %539 = vmatpush2.bf16.msra.mxu1 %v1287_v44  ;;  %v1372_v43 = vld [vmem:[#allocation7 + $0xe0] ss:$8 sps:$4 sm:$0xff]  }
  0x53   :  { %499 = vmatprep.subr.bf16.mxu0 %v1288_v45  ;;  %540 = vmatprep.subr.bf16.mxu1 %v1290_v46  ;;  %v1375_v44 = vld [vmem:[#allocation7 + $0x1e0] ss:$8 sps:$4 sm:$0xff]   ;;  %v1380_v45 = vld [vmem:[#allocation7 + $0xd4] ss:$8 sps:$4 sm:$0xff]  }
  0x54   :  { %v1383_v46 = vld [vmem:[#allocation7 + $0x1d4] ss:$8 sps:$4 sm:$0xff]  }
  0x56   :  { %500 = vmatpush2.bf16.msra.mxu0 %v1292_v49  ;;  %541 = vmatpush2.bf16.msra.mxu1 %v1293_v50  ;;  %v1386_v49 = vld [vmem:[#allocation7 + $0xc4] ss:$8 sps:$4 sm:$0xff]  }
  0x57   :  { %501 = vmatprep.subr.bf16.mxu0 %v1294_v51  ;;  %542 = vmatprep.subr.bf16.mxu1 %v1296_v52  ;;  %v1389_v50 = vld [vmem:[#allocation7 + $0x1c4] ss:$8 sps:$4 sm:$0xff]   ;;  %v1384_v51 = vld [vmem:[#allocation7 + $0xc0] ss:$8 sps:$4 sm:$0xff]  }
  0x58   :  { %v1387_v52 = vld [vmem:[#allocation7 + $0x1c0] ss:$8 sps:$4 sm:$0xff]  }
  0x5a   :  { %502 = vmatpush2.bf16.msra.mxu0 %v1298_v53  ;;  %543 = vmatpush2.bf16.msra.mxu1 %v1299_v54  ;;  %v1392_v53 = vld [vmem:[#allocation7 + $0xb4] ss:$8 sps:$4 sm:$0xff]  }
  0x5b   :  { %503 = vmatprep.subr.bf16.mxu0 %v1300_v55  ;;  %544 = vmatprep.subr.bf16.mxu1 %v1302_v56  ;;  %v1395_v54 = vld [vmem:[#allocation7 + $0x1b4] ss:$8 sps:$4 sm:$0xff]   ;;  %v1390_v55 = vld [vmem:[#allocation7 + $0xb0] ss:$8 sps:$4 sm:$0xff]  }
  0x5c   :  { %v1393_v56 = vld [vmem:[#allocation7 + $0x1b0] ss:$8 sps:$4 sm:$0xff]  }
  0x5e   :  { %504 = vmatpush2.bf16.msra.mxu0 %v1304_v57  ;;  %545 = vmatpush2.bf16.msra.mxu1 %v1305_v58  ;;  %v1398_v57 = vld [vmem:[#allocation7 + $0xa4] ss:$8 sps:$4 sm:$0xff]  }
  0x5f   :  { %505 = vmatprep.subr.bf16.mxu0 %v1306_v59  ;;  %546 = vmatprep.subr.bf16.mxu1 %v1308_v60  ;;  %v1401_v58 = vld [vmem:[#allocation7 + $0x1a4] ss:$8 sps:$4 sm:$0xff]   ;;  %v1396_v59 = vld [vmem:[#allocation7 + $0xa0] ss:$8 sps:$4 sm:$0xff]  }
  0x60   :  { %v1399_v60 = vld [vmem:[#allocation7 + $0x1a0] ss:$8 sps:$4 sm:$0xff]  }
  0x62   :  { %506 = vmatpush2.bf16.msra.mxu0 %v1310_v61  ;;  %547 = vmatpush2.bf16.msra.mxu1 %v1311_v62  ;;  %v1404_v61 = vld [vmem:[#allocation7 + $0x94] ss:$8 sps:$4 sm:$0xff]  }
  0x63   :  { %507 = vmatprep.subr.bf16.mxu0 %v1312_v63  ;;  %548 = vmatprep.subr.bf16.mxu1 %v1314_v0  ;;  %v1407_v62 = vld [vmem:[#allocation7 + $0x194] ss:$8 sps:$4 sm:$0xff]   ;;  %v1402_v63 = vld [vmem:[#allocation7 + $0x90] ss:$8 sps:$4 sm:$0xff]  }
  0x64   :  { %v1405_v0 = vld [vmem:[#allocation7 + $0x190] ss:$8 sps:$4 sm:$0xff]  }
  0x66   :  { %508 = vmatpush2.bf16.msra.mxu0 %v1316_v1  ;;  %549 = vmatpush2.bf16.msra.mxu1 %v1317_v2  ;;  %v1410_v1 = vld [vmem:[#allocation7 + $0x84] ss:$8 sps:$4 sm:$0xff]  }
  0x67   :  { %967 = vmatprep.subr.bf16.mxu0 %v1320_v4  ;;  %1008 = vmatprep.subr.bf16.mxu1 %v1323_v5  ;;  %v1413_v2 = vld [vmem:[#allocation7 + $0x184] ss:$8 sps:$4 sm:$0xff]   ;;  %v1411_v4 = vld [vmem:[#allocation7 + $0x180] ss:$8 sps:$4 sm:$0xff]   ;;  %v137_v5 = vlaneseq }
  0x69   :  { %510 = vmatmul.mubr.bf16.vlgmr.msra.gmra.mxu0 %v69_v6  ;;  %551 = vmatmul.mubr.bf16.vlgmr.msra.gmra.mxu1 %v69_v6  ;;  %v138_v6 = vshrl.u32 %v137_v5, 7 }
  0x6a   :  { %968 = vmatpush1.bf16.msra.mxu0 %v1318_v7  ;;  %1009 = vmatpush1.bf16.msra.mxu1 %v1321_v8 }
  0x6b   :  { %969 = vmatprep.subr.bf16.mxu0 %v1326_v9  ;;  %1010 = vmatprep.subr.bf16.mxu1 %v1329_v10  ;;  %v139_v7 = vsub.s32 0, %v138_v6  ;;  %v147_v8 = vsub.s32 2, %v138_v6  ;;  %v135_v9 = vld [vmem:[%s1551_s2] sm:$0xf]  ;;  %v143_v10 = vsub.s32 1, %v138_v6 }
  0x6e   :  { %970 = vmatpush1.bf16.msra.mxu0 %v1324_v11  ;;  %1011 = vmatpush1.bf16.msra.mxu1 %v1327_v12  ;;  %v151_v11 = vsub.s32 3, %v138_v6  ;;  %v140_v12 = vrot.slane %v135_v9, %v139_v7 }
  0x6f   :  { %971 = vmatprep.subr.bf16.mxu0 %v1332_v13  ;;  %1012 = vmatprep.subr.bf16.mxu1 %v1335_v14  ;;  %v148_v13 = vrot.slane %v135_v9, %v147_v8  ;;  %v144_v14 = vrot.slane %v135_v9, %v143_v10 }
  0x72   :  { %972 = vmatpush1.bf16.msra.mxu0 %v1330_v15  ;;  %1013 = vmatpush1.bf16.msra.mxu1 %v1333_v16  ;;  %v152_v15 = vrot.slane %v135_v9, %v151_v11 }
  0x73   :  { %973 = vmatprep.subr.bf16.mxu0 %v1338_v17  ;;  %1014 = vmatprep.subr.bf16.mxu1 %v1341_v18 }
  0x76   :  { %974 = vmatpush1.bf16.msra.mxu0 %v1336_v19  ;;  %1015 = vmatpush1.bf16.msra.mxu1 %v1339_v20 }
  0x77   :  { %975 = vmatprep.subr.bf16.mxu0 %v1344_v21  ;;  %1016 = vmatprep.subr.bf16.mxu1 %v1347_v22 }
  0x7a   :  { %976 = vmatpush1.bf16.msra.mxu0 %v1342_v23  ;;  %1017 = vmatpush1.bf16.msra.mxu1 %v1345_v24 }
  0x7b   :  { %977 = vmatprep.subr.bf16.mxu0 %v1350_v25  ;;  %1018 = vmatprep.subr.bf16.mxu1 %v1353_v26 }
  0x7e   :  { %978 = vmatpush1.bf16.msra.mxu0 %v1348_v27  ;;  %1019 = vmatpush1.bf16.msra.mxu1 %v1351_v28 }
  0x7f   :  { %979 = vmatprep.subr.bf16.mxu0 %v1356_v29  ;;  %1020 = vmatprep.subr.bf16.mxu1 %v1359_v30 }
  0x82   :  { %980 = vmatpush1.bf16.msra.mxu0 %v1354_v31  ;;  %1021 = vmatpush1.bf16.msra.mxu1 %v1357_v32 }
  0x83   :  { %981 = vmatprep.subr.bf16.mxu0 %v1362_v33  ;;  %1022 = vmatprep.subr.bf16.mxu1 %v1365_v34 }
  0x86   :  { %982 = vmatpush1.bf16.msra.mxu0 %v1360_v35  ;;  %1023 = vmatpush1.bf16.msra.mxu1 %v1363_v36 }
  0x87   :  { %983 = vmatprep.subr.bf16.mxu0 %v1368_v37  ;;  %1024 = vmatprep.subr.bf16.mxu1 %v1371_v38 }
  0x8a   :  { %984 = vmatpush2.bf16.msra.mxu0 %v1366_v39  ;;  %1025 = vmatpush2.bf16.msra.mxu1 %v1369_v40  ;;  %v635_v40 = vld [vmem:[%s1553_s4] sm:$0x3] }
  0x8b   :  { %985 = vmatprep.subr.bf16.mxu0 %v1374_v41  ;;  %1026 = vmatprep.subr.bf16.mxu1 %v1377_v42  ;;  %v640_v41 = vrot.slane %v635_v40, %v139_v7  ;;  %v644_v42 = vrot.slane %v635_v40, %v143_v10 }
  0x8e   :  { %986 = vmatpush2.bf16.msra.mxu0 %v1372_v43  ;;  %1027 = vmatpush2.bf16.msra.mxu1 %v1375_v44 }
  0x8f   :  { %987 = vmatprep.subr.bf16.mxu0 %v1380_v45  ;;  %1028 = vmatprep.subr.bf16.mxu1 %v1383_v46 }
  0x92   :  { %988 = vmatpush2.bf16.msra.mxu0 %v1378_v47  ;;  %1029 = vmatpush2.bf16.msra.mxu1 %v1381_v48 }
  0x93   :  { %989 = vmatprep.subr.bf16.mxu0 %v1386_v49  ;;  %1030 = vmatprep.subr.bf16.mxu1 %v1389_v50 }
  0x96   :  { %990 = vmatpush2.bf16.msra.mxu0 %v1384_v51  ;;  %1031 = vmatpush2.bf16.msra.mxu1 %v1387_v52  ;;  %v1053_v52 = vld [vmem:[%s1554_s5] sm:$0x3] }
  0x97   :  { %991 = vmatprep.subr.bf16.mxu0 %v1392_v53  ;;  %1032 = vmatprep.subr.bf16.mxu1 %v1395_v54 }
  0x9a   :  { %992 = vmatpush2.bf16.msra.mxu0 %v1390_v55  ;;  %1033 = vmatpush2.bf16.msra.mxu1 %v1393_v56 }
  0x9b   :  { %993 = vmatprep.subr.bf16.mxu0 %v1398_v57  ;;  %1034 = vmatprep.subr.bf16.mxu1 %v1401_v58 }
  0x9e   :  { %994 = vmatpush2.bf16.msra.mxu0 %v1396_v59  ;;  %1035 = vmatpush2.bf16.msra.mxu1 %v1399_v60  ;;  %v1058_v59 = vrot.slane %v1053_v52, %v139_v7  ;;  %v1062_v60 = vrot.slane %v1053_v52, %v143_v10 }
  0x9f   :  { %995 = vmatprep.subr.bf16.mxu0 %v1404_v61  ;;  %1036 = vmatprep.subr.bf16.mxu1 %v1407_v62 }
  0xa2   :  { %996 = vmatpush2.bf16.msra.mxu0 %v1402_v63  ;;  %1037 = vmatpush2.bf16.msra.mxu1 %v1405_v0 }
  0xa3   :  { %997 = vmatprep.subr.bf16.mxu0 %v1410_v1  ;;  %1038 = vmatprep.subr.bf16.mxu1 %v1413_v2  ;;  %v1214_v1 = vld [vmem:[#allocation2] ss:$0 sm:$0xff] }
  0xa6   :  { %998 = vmatpush2.bf16.msra.mxu0 %v1408_v3  ;;  %1039 = vmatpush2.bf16.msra.mxu1 %v1411_v4 }
 0x129   :  { %v511_v16 = vpop.f32.mrf.mxu0  ;;  %v552_v17 = vpop.f32.mrf.mxu1 }
 0x12a   :  { %v512_v18 = vadd.f32 %v511_v16, %v140_v12  ;;  %v553_v19 = vadd.f32 %v552_v17, %v148_v13 }
 0x12b   :  { %v513_v20 = vpop.f32.mrf.mxu0  ;;  %v554_v21 = vpop.f32.mrf.mxu1 }
 0x12c   :  { %v559_v22 = vmul.f32 0.2, %v512_v18  ;;  %v561_v23 = vmul.f32 0.2, %v553_v19  ;;  %v514_v24 = vadd.f32 %v513_v20, %v144_v14  ;;  %v555_v25 = vadd.f32 %v554_v21, %v152_v15 }
 0x12d   :  { %v515_v26 = vpop.f32.mrf.mxu0  ;;  %v556_v27 = vpop.f32.mrf.mxu1 }
 0x12e   :  { %v560_v28 = vmul.f32 0.2, %v514_v24  ;;  %v562_v29 = vmul.f32 0.2, %v555_v25  ;;  %v563_v30 = vmax.f32 %v512_v18, %v559_v22  ;;  %v565_v31 = vmax.f32 %v553_v19, %v561_v23 }
 0x12f   :  { %v516_v32 = vpop.f32.mrf.mxu0  ;;  %v557_v33 = vpop.f32.mrf.mxu1 }
 0x130   :  { %v564_v34 = vmax.f32 %v514_v24, %v560_v28  ;;  %v566_v35 = vmax.f32 %v555_v25, %v562_v29  ;;  %v567_v38 = vpack.c.bf16 %v563_v30, %v563_v30  ;;  %v569_v39 = vpack.c.bf16 %v565_v31, %v565_v31 }
 0x132   :  { %v568_v36 = vpack.c.bf16 %v564_v34, %v564_v34  ;;  %v570_v37 = vpack.c.bf16 %v566_v35, %v566_v35 }
 0x134   :  { %999 = vmatprep.mubr.bf16.mxu0 %v568_v36  ;;  %1040 = vmatprep.mubr.bf16.mxu1 %v570_v37 }
 0x135   :  { %1000 = vmatmul.mubr.bf16.vlgmr.msra.gmra.mxu0 %v567_v38  ;;  %1041 = vmatmul.mubr.bf16.vlgmr.msra.gmra.mxu1 %v569_v39 }
 0x1f5   :  { %v1001_v43 = vpop.f32.mrf.mxu0  ;;  %v1042_v44 = vpop.f32.mrf.mxu1 }
 0x1f6   :  { %v1002_v45 = vadd.f32 %v1001_v43, %v640_v41 }
 0x1f7   :  { %v1003_v46 = vpop.f32.mrf.mxu0  ;;  %v1044_v47 = vpop.f32.mrf.mxu1 }
 0x1f8   :  { %v1043_v48 = vadd.f32 %v1042_v44, %v1002_v45  ;;  %v1004_v49 = vadd.f32 %v1003_v46, %v644_v42 }
 0x1f9   :  { %v1005_v50 = vpop.f32.mrf.mxu0  ;;  %v1046_v51 = vpop.f32.mrf.mxu1 }
 0x1fa   :  { %v1049_v53 = vmul.f32 0.2, %v1043_v48  ;;  %v1045_v54 = vadd.f32 %v1044_v47, %v1004_v49 }
 0x1fb   :  { %v1006_v55 = vpop.f32.mrf.mxu0  ;;  %v1047_v56 = vpop.f32.mrf.mxu1 }
 0x1fc   :  { %v1051_v57 = vmax.f32 %v1043_v48, %v1049_v53  ;;  %v1050_v58 = vmul.f32 0.2, %v1045_v54 }
 0x1fe   :  { %v1052_v61 = vmax.f32 %v1045_v54, %v1050_v58  ;;  %v1065_v62 = vmul.f32 %v1058_v59, %v1051_v57 }
 0x200   :  { %v1066_v63 = vmul.f32 %v1062_v60, %v1052_v61 }
 0x202   :  { %v1067_v0 = vadd.f32 %v1066_v63, %v1065_v62 }
 0x204   :  { %1068 = vadd.xlane.f32.xlu0 %v1067_v0 }
 0x28d   :  { %v1069_v2 = vpop.xlane.xlu0 %1068 }
 0x28e   :  { %v1077_v3 = vadd.f32 %v1214_v1, %v1069_v2 }
 0x290   :  { %1079 = vst.msk [vmem:[%s1556_s7] sm:$0xff] %vm1078_vm0, %v1077_v3 }
 0x291   :  { %1084 = vsyncpa [#allocation4], 1 }
 0x292   :  { %1085 = vsyncpa [#allocation6], 1 }

</bundles_post_ra>
